<compile_context>
chip_gen: v7x
topology: tpu7x:2x2x1
jax: 0.10.0
libtpu: 0.0.40
codegen_flags: <defaults>
</compile_context>

<pallas_src>
import functools

import jax
import jax.numpy as jnp
from jax.experimental import pallas as pl
from jax.experimental.pallas import tpu as pltpu


def _round_up(x, m):
    return ((x + m - 1) // m) * m


def _triplet_loss_kernel(a_ref, p_ref, n_ref, out_ref, *,
                         pos_margin, neg_margin, valid_b, block_b):
    # Promote to f32 per-tile; inputs may have streamed in as bf16.
    a = a_ref[...].astype(jnp.float32)
    p = p_ref[...].astype(jnp.float32)
    n = n_ref[...].astype(jnp.float32)

    dp = a - p
    dn = a - n
    # keepdims=True keeps everything 2-D (tb, 1): stable sublane/lane layout.
    d_pos = jnp.sum(dp * dp, axis=1, keepdims=True)   # (tb, 1)
    d_neg = jnp.sum(dn * dn, axis=1, keepdims=True)   # (tb, 1)

    losses = (jnp.maximum(neg_margin - d_neg, 0.0)
              + jnp.maximum(d_pos - pos_margin, 0.0))  # (tb, 1)

    # Mask padded rows (a zero padded row would otherwise contribute
    # neg_margin to the sum).
    row = (pl.program_id(0) * block_b
           + jax.lax.broadcasted_iota(jnp.int32, losses.shape, 0))
    losses = jnp.where(row < valid_b, losses, 0.0)

    # Per-block partial sum -> one full, unmasked vreg store per grid step
    # (lane-dense output) instead of block_b/8 masked stores.
    partial = jnp.sum(losses)
    out_ref[...] = jnp.zeros_like(out_ref) + partial


def _vmem_limit_bytes():
    vmem_cap = 64 * 1024 * 1024  # conservative fallback (v7x physical)
    try:
        info = pltpu.get_tpu_info()
        vmem_cap = int(getattr(info, "vmem_capacity_bytes", vmem_cap))
    except Exception:
        pass
    # ~3/4 of physical: 48 MiB on v7x (64 MiB), 96 MiB on v5e/v6e (128 MiB).
    return (vmem_cap * 3) // 4


def _auto_block_b(D, itemsize, vmem_limit, sub):
    # Capacity math uses the lane-padded width: a (block_b, D) tile occupies
    # round_up(D, 128) lanes in VMEM regardless of D.
    d_lanes = _round_up(D, 128)
    # 3 inputs x 2 pipeline buffers in native dtype + ~5 tile-sized f32
    # intermediates (promotions / diffs / squares) live in the kernel body.
    per_row = 3 * 2 * d_lanes * itemsize + 5 * d_lanes * 4
    budget = (vmem_limit * 4) // 5          # headroom for Mosaic scratch
    cap_rows = max(sub, budget // per_row)
    block_b = (cap_rows // sub) * sub
    return max(sub, min(block_b, 65536))


def _dimension_semantics(num_blocks):
    # Only CORE_PARALLEL actually shards a grid axis across v7x's 2 TCs;
    # plain "parallel" is kept elsewhere (1 TC/chip on v5e/v6e).
    try:
        dk = jax.devices()[0].device_kind.lower().replace(" ", "")
        is_v7 = ("v7" in dk) or ("tpu7" in dk)
    except Exception:
        is_v7 = False
    if is_v7 and num_blocks >= 2 and hasattr(pltpu, "CORE_PARALLEL"):
        return (pltpu.CORE_PARALLEL,)
    return ("parallel",)


def triplet_loss_double_margin(anchor, positive, negative,
                               pos_margin=1.0, neg_margin=3.0,
                               block_b=None):
    """Pallas TPU forward of TripletLossDoubleMargin. Returns a scalar f32."""
    B, D = anchor.shape
    assert positive.shape == (B, D) and negative.shape == (B, D)

    itemsize = jnp.dtype(anchor.dtype).itemsize
    # Minimum sublane multiple for the input dtype (f32: 8, bf16: 16, int8/fp8: 32).
    sub = {4: 8, 2: 16, 1: 32}.get(itemsize, 8)

    vmem_limit = _vmem_limit_bytes()

    if block_b is None:
        block_b = _auto_block_b(D, itemsize, vmem_limit, sub)
    else:
        block_b = max(sub, _round_up(block_b, sub))
    # No point tiling past the (rounded) batch.
    block_b = max(sub, min(block_b, _round_up(B, sub)))

    # Pad the batch so it divides evenly; padded rows are masked INSIDE the
    # kernel before the per-block partial sum.
    B_pad = _round_up(B, block_b)
    if B_pad != B:
        pad = ((0, B_pad - B), (0, 0))
        anchor = jnp.pad(anchor, pad)
        positive = jnp.pad(positive, pad)
        negative = jnp.pad(negative, pad)

    num_blocks = B_pad // block_b

    kernel = functools.partial(
        _triplet_loss_kernel,
        pos_margin=float(pos_margin),
        neg_margin=float(neg_margin),
        valid_b=int(B),
        block_b=int(block_b),
    )

    # Input blocks: last dim = full D (always layout-legal: equals array dim).
    emb_spec = pl.BlockSpec((block_b, D), lambda i: (i, 0))
    # Output: one (8,128) f32 block per grid step, broadcast-filled with the
    # block's partial sum -> single unmasked vreg store per step.
    out_spec = pl.BlockSpec((1, 8, 128), lambda i: (i, 0, 0))

    cost = pl.CostEstimate(
        flops=7 * B_pad * D,                 # subs, squares, adds — negligible
        transcendentals=0,
        bytes_accessed=3 * B_pad * D * itemsize + num_blocks * 8 * 128 * 4,
    )

    partial_blocks = pl.pallas_call(
        kernel,
        out_shape=jax.ShapeDtypeStruct((num_blocks, 8, 128), jnp.float32),
        grid_spec=pltpu.PrefetchScalarGridSpec(
            num_scalar_prefetch=0,
            grid=(num_blocks,),
            in_specs=[emb_spec, emb_spec, emb_spec],
            out_specs=out_spec,
        ),
        compiler_params=pltpu.CompilerParams(
            dimension_semantics=_dimension_semantics(num_blocks),
            vmem_limit_bytes=int(vmem_limit),
        ),
        cost_estimate=cost,
    )(anchor, positive, negative)

    # Tiny final reduction outside the kernel: one scalar per block.
    return jnp.sum(partial_blocks[:, 0, 0]) / jnp.float32(B)


def _reference(anchor, positive, negative, pos_margin=1.0, neg_margin=3.0):
    a = anchor.astype(jnp.float32)
    p = positive.astype(jnp.float32)
    n = negative.astype(jnp.float32)
    d_pos = jnp.sum((a - p) ** 2, axis=1)
    d_neg = jnp.sum((a - n) ** 2, axis=1)
    losses = jnp.maximum(neg_margin - d_neg, 0.0) + jnp.maximum(d_pos - pos_margin, 0.0)
    return jnp.mean(losses)


if __name__ == "__main__":
    key = jax.random.PRNGKey(0)

    def _make(key, B, D, dtype=jnp.float32):
        k_a, k_p, k_n, key = jax.random.split(key, 4)
        a = jax.random.normal(k_a, (B, D), dtype=jnp.float32).astype(dtype)
        p = jax.random.normal(k_p, (B, D), dtype=jnp.float32).astype(dtype)
        n = jax.random.normal(k_n, (B, D), dtype=jnp.float32).astype(dtype)
        return key, a, p, n

    # Check 1: batch divides the tile exactly (auto block_b, single step).
    key, a, p, n = _make(key, 8, 32)
    loss = jax.block_until_ready(triplet_loss_double_margin(a, p, n, 1.0, 3.0))
    ref = _reference(a, p, n, 1.0, 3.0)
    assert jnp.allclose(loss, ref, rtol=1e-5, atol=1e-5), (loss, ref)

    # Check 2: batch that requires padding (verifies in-kernel masking).
    key, a2, p2, n2 = _make(key, 12, 32)
    loss2 = jax.block_until_ready(triplet_loss_double_margin(a2, p2, n2, 1.0, 3.0))
    ref2 = _reference(a2, p2, n2, 1.0, 3.0)
    assert jnp.allclose(loss2, ref2, rtol=1e-5, atol=1e-5), (loss2, ref2)

    # Check 3: multi-step grid (explicit small block_b) + padding in last block.
    key, a3, p3, n3 = _make(key, 300, 64)
    loss3 = jax.block_until_ready(
        triplet_loss_double_margin(a3, p3, n3, 1.0, 3.0, block_b=64))
    ref3 = _reference(a3, p3, n3, 1.0, 3.0)
    assert jnp.allclose(loss3, ref3, rtol=1e-5, atol=1e-5), (loss3, ref3)

    # Check 4: bf16 inputs stream in native dtype, promoted to f32 in-kernel.
    key, a4, p4, n4 = _make(key, 40, 48, dtype=jnp.bfloat16)
    loss4 = jax.block_until_ready(
        triplet_loss_double_margin(a4, p4, n4, 1.0, 3.0, block_b=16))
    ref4 = _reference(a4, p4, n4, 1.0, 3.0)
    assert jnp.allclose(loss4, ref4, rtol=1e-4, atol=1e-4), (loss4, ref4)

    print("KERNEL_OK")
</pallas_src>

<mosaic_0001>
module attributes {stable_mosaic.version = 11 : i64} {
  func.func @_triplet_loss_kernel(%arg0: i32, %arg1: memref<8x32xf32, #tpu.memory_space<vmem>>, %arg2: memref<8x32xf32, #tpu.memory_space<vmem>>, %arg3: memref<8x32xf32, #tpu.memory_space<vmem>>, %arg4: memref<1x8x128xf32, #tpu.memory_space<vmem>>) attributes {dimension_semantics = [#tpu.dimension_semantics<parallel>], iteration_bounds = array<i64: 1>, scalar_prefetch = 0 : i64, scratch_operands = 0 : i64, tpu.core_type = #tpu.core_type<tc>, window_params = [{transform_indices = @transform_0, window_bounds = array<i64: 8, 32>}, {transform_indices = @transform_1, window_bounds = array<i64: 8, 32>}, {transform_indices = @transform_2, window_bounds = array<i64: 8, 32>}, {transform_indices = @transform_3, window_bounds = array<i64: 1, 8, 128>}]} {
    %c0 = arith.constant 0 : index
    %c0_0 = arith.constant 0 : index
    %0 = vector.load %arg1[%c0, %c0_0] : memref<8x32xf32, #tpu.memory_space<vmem>>, vector<8x32xf32>
    %c0_1 = arith.constant 0 : index
    %c0_2 = arith.constant 0 : index
    %1 = vector.load %arg2[%c0_1, %c0_2] : memref<8x32xf32, #tpu.memory_space<vmem>>, vector<8x32xf32>
    %c0_3 = arith.constant 0 : index
    %c0_4 = arith.constant 0 : index
    %2 = vector.load %arg3[%c0_3, %c0_4] : memref<8x32xf32, #tpu.memory_space<vmem>>, vector<8x32xf32>
    %3 = arith.subf %0, %1 : vector<8x32xf32>
    %4 = arith.subf %0, %2 : vector<8x32xf32>
    %5 = arith.mulf %3, %3 : vector<8x32xf32>
    %cst = arith.constant dense<0.000000e+00> : vector<8xf32>
    %6 = vector.multi_reduction <add>, %5, %cst [1] : vector<8x32xf32> to vector<8xf32>
    %7 = vector.shape_cast %6 : vector<8xf32> to vector<8x1xf32>
    %8 = arith.mulf %4, %4 : vector<8x32xf32>
    %cst_5 = arith.constant dense<0.000000e+00> : vector<8xf32>
    %9 = vector.multi_reduction <add>, %8, %cst_5 [1] : vector<8x32xf32> to vector<8xf32>
    %10 = vector.shape_cast %9 : vector<8xf32> to vector<8x1xf32>
    %cst_6 = arith.constant 3.000000e+00 : f32
    %11 = vector.broadcast %cst_6 : f32 to vector<8x1xf32>
    %12 = arith.subf %11, %10 : vector<8x1xf32>
    %cst_7 = arith.constant 0.000000e+00 : f32
    %13 = vector.broadcast %cst_7 : f32 to vector<8x1xf32>
    %14 = arith.maximumf %12, %13 : vector<8x1xf32>
    %cst_8 = arith.constant 1.000000e+00 : f32
    %15 = vector.broadcast %cst_8 : f32 to vector<8x1xf32>
    %16 = arith.subf %7, %15 : vector<8x1xf32>
    %cst_9 = arith.constant 0.000000e+00 : f32
    %17 = vector.broadcast %cst_9 : f32 to vector<8x1xf32>
    %18 = arith.maximumf %16, %17 : vector<8x1xf32>
    %19 = arith.addf %14, %18 : vector<8x1xf32>
    %c8_i32 = arith.constant 8 : i32
    %20 = arith.muli %arg0, %c8_i32 : i32
    %21 = tpu.iota {dimensions = array<i32: 0>} : vector<8x1xi32>
    %22 = vector.broadcast %20 : i32 to vector<8x1xi32>
    %23 = arith.addi %22, %21 : vector<8x1xi32>
    %c8_i32_10 = arith.constant 8 : i32
    %24 = vector.broadcast %c8_i32_10 : i32 to vector<8x1xi32>
    %25 = arith.cmpi slt, %23, %24 : vector<8x1xi32>
    %cst_11 = arith.constant 0.000000e+00 : f32
    %26 = vector.broadcast %cst_11 : f32 to vector<8x1xf32>
    %27 = arith.select %25, %19, %26 : vector<8x1xi1>, vector<8x1xf32>
    %28 = vector.shape_cast %27 : vector<8x1xf32> to vector<1x8x1xf32>
    %cst_12 = arith.constant dense<0.000000e+00> : vector<1xf32>
    %29 = vector.multi_reduction <add>, %28, %cst_12 [1, 2] : vector<1x8x1xf32> to vector<1xf32>
    %30 = vector.shape_cast %29 : vector<1xf32> to vector<1x1x1xf32>
    %31 = vector.extract %30[0, 0, 0] : f32 from vector<1x1x1xf32>
    %cst_13 = arith.constant 0.000000e+00 : f32
    %32 = vector.broadcast %cst_13 : f32 to vector<1x8x128xf32>
    %33 = vector.broadcast %31 : f32 to vector<1x8x128xf32>
    %34 = arith.addf %32, %33 : vector<1x8x128xf32>
    %c0_14 = arith.constant 0 : index
    %c0_15 = arith.constant 0 : index
    %c0_16 = arith.constant 0 : index
    %35 = vector.load %arg4[%c0_14, %c0_15, %c0_16] : memref<1x8x128xf32, #tpu.memory_space<vmem>>, vector<1x8x128xf32>
    tpu.vector_store %arg4[%c0_14, %c0_15, %c0_16], %34 {strides = array<i32>} : memref<1x8x128xf32, #tpu.memory_space<vmem>>, vector<1x8x128xf32>,
    return
  }
  func.func @transform_0(%arg0: i32) -> (i32, i32) {
    %c0_i32 = arith.constant 0 : i32
    %c0_i32_0 = arith.constant 0 : i32
    return %arg0, %c0_i32 : i32, i32
  }
  func.func @transform_1(%arg0: i32) -> (i32, i32) {
    %c0_i32 = arith.constant 0 : i32
    %c0_i32_0 = arith.constant 0 : i32
    return %arg0, %c0_i32 : i32, i32
  }
  func.func @transform_2(%arg0: i32) -> (i32, i32) {
    %c0_i32 = arith.constant 0 : i32
    %c0_i32_0 = arith.constant 0 : i32
    return %arg0, %c0_i32 : i32, i32
  }
  func.func @transform_3(%arg0: i32) -> (i32, i32, i32) {
    %c0_i32 = arith.constant 0 : i32
    %c0_i32_0 = arith.constant 0 : i32
    %c0_i32_1 = arith.constant 0 : i32
    return %arg0, %c0_i32, %c0_i32_0 : i32, i32, i32
  }
}

</mosaic_0001>

<bundles_post_ra>
// kernel: tpu_custom_call.1
= control target key start
LH: loop header
LB: loop body
LE: loop exit
PB: predicated region body
PF: predicated region fallthrough
CT: control target
= control target key end

     0   :  { %8 = vsyncpa [#allocation3], 0  ;;  %s279_s0 = inlined_call_operand.hbm [shape: f32[8,32], index: 0, kind: input, shape index: {}]   ;;  %s280_s1 = inlined_call_operand.hbm [shape: f32[8,32], index: 1, kind: input, shape index: {}]   ;;  %s281_s2 = inlined_call_operand.hbm [shape: f32[8,32], index: 2, kind: input, shape index: {}]   ;;  %s282_s3 = inlined_call_operand.hbm [shape: f32[1,8,128], index: 3, kind: output, shape index: {}]  }
   0x1   :  { %9 = vsyncpa [#allocation6], 0 }
   0x2   :  { %10 = vsyncpa [#allocation4], 0  ;;  %s207_s12 = smov [#allocation5]   ;;  %s208_s14 = smov [#allocation2]  }
   0x3   :  { %s27_s13 = sshll.u32 %s207_s12, 4  ;;  %s17_s15 = sshll.u32 %s208_s14, 4  ;;  %s28_s13 = int_to_ptr.vmem [resolvable:$true] %s27_s13  ;;  %s18_s15 = int_to_ptr.vmem [resolvable:$true] %s17_s15 }
   0x4   :  { %s113_s18 = scalar_lea.hbm %s280_s1, 128 }
   0x5   :  { %p114_p0 = scmp.ne.s32.totalorder %s280_s1, %s113_s18  ;;  %p117_p1 = scmp.lt.u32.totalorder %s113_s18, %s280_s1 }
   0x7   :  { %p119_p2 = pnand %p117_p1, %p114_p0 }
   0x9   :  { %122 = shalt.err (!%p119_p2)
}
   0xa   :  { %s123_s23 = scalar_lea.vmem %s28_s13, 128  ;;  %p128_p4 = scmp.lt.s32.totalorder %s28_s13, %s28_s13 }
   0xb   :  { %p124_p3 = scmp.ne.s32.totalorder %s28_s13, %s123_s23  ;;  %p129_p5 = scmp.lt.s32.totalorder %s123_s23, %s123_s23 }
   0xd   :  { %p130_p6 = por %p129_p5, %p128_p4 }
   0xf   :  { %p131_p7 = pnand %p130_p6, %p124_p3 }
  0x11   :  { %134 = shalt.err (!%p131_p7)
}
  0x12   :  { %30 = dma.hbm_to_vmem [thread:$0]  %s280_s1, 128, %s28_s13, [#allocation6]  }
  0x13   :  { %s135_s28 = scalar_lea.hbm %s279_s0, 128 }
  0x14   :  { %p136_p8 = scmp.ne.s32.totalorder %s279_s0, %s135_s28  ;;  %p139_p9 = scmp.lt.u32.totalorder %s135_s28, %s279_s0 }
  0x16   :  { %p141_p10 = pnand %p139_p9, %p136_p8 }
  0x18   :  { %144 = shalt.err (!%p141_p10)
}
  0x19   :  { %s145_s6 = scalar_lea.vmem %s18_s15, 128  ;;  %p150_p12 = scmp.lt.s32.totalorder %s18_s15, %s18_s15 }
  0x1a   :  { %p146_p11 = scmp.ne.s32.totalorder %s18_s15, %s145_s6  ;;  %p151_p13 = scmp.lt.s32.totalorder %s145_s6, %s145_s6 }
  0x1c   :  { %p152_p0 = por %p151_p13, %p150_p12 }
  0x1e   :  { %p153_p1 = pnand %p152_p0, %p146_p11 }
  0x20   :  { %156 = shalt.err (!%p153_p1)
}
  0x21   :  { %20 = dma.hbm_to_vmem [thread:$0]  %s279_s0, 128, %s18_s15, [#allocation3]  }
  0x22   :  { %s209_s8 = smov [#allocation7]   ;;  %s157_s12 = scalar_lea.hbm %s281_s2, 128 }
  0x23   :  { %s37_s9 = sshll.u32 %s209_s8, 4  ;;  %p158_p2 = scmp.ne.s32.totalorder %s281_s2, %s157_s12  ;;  %s38_s9 = int_to_ptr.vmem [resolvable:$true] %s37_s9 }
  0x24   :  { %p161_p3 = scmp.lt.u32.totalorder %s157_s12, %s281_s2 }
  0x26   :  { %p163_p4 = pnand %p161_p3, %p158_p2 }
  0x28   :  { %166 = shalt.err (!%p163_p4)
}
  0x29   :  { %s167_s18 = scalar_lea.vmem %s38_s9, 128  ;;  %p172_p6 = scmp.lt.s32.totalorder %s38_s9, %s38_s9 }
  0x2a   :  { %p168_p5 = scmp.ne.s32.totalorder %s38_s9, %s167_s18  ;;  %p173_p7 = scmp.lt.s32.totalorder %s167_s18, %s167_s18 }
  0x2c   :  { %p174_p8 = por %p173_p7, %p172_p6 }
  0x2e   :  { %p175_p9 = pnand %p174_p8, %p168_p5 }
  0x30   :  { %178 = shalt.err (!%p175_p9)
}
  0x31   :  { %40 = dma.hbm_to_vmem [thread:$0]  %s281_s2, 128, %s38_s9, [#allocation6]  }
  0x32   :  { %201 = dma.done.wait [#allocation3], 128  }
  0x33   :  { %202 = vsyncadd [#allocation3], 4294967168 }
  0x34   :  { %203 = dma.done.wait [#allocation6], 256  }
  0x35   :  { %204 = vsyncadd [#allocation6], 4294967040  ;;  %v50_v0 = vld [vmem:[#allocation2] sm:$0xff]  ;;  %v51_v1 = vld [vmem:[#allocation5] sm:$0xff]  ;;  %vm56_vm0 = vcmask 261120   ;;  %vm76_vm1 = vcmask 7168  }
  0x36   :  { %v52_v2 = vld [vmem:[#allocation7] sm:$0xff]  ;;  %v53_v3 = vsub.f32 %v50_v0, %v51_v1  ;;  %s210_s2 = smov [#allocation8]  }
  0x37   :  { %v54_v4 = vsub.f32 %v50_v0, %v52_v2  ;;  %s96_s19 = sshll.u32 %s210_s2, 4  ;;  %s97_s19 = int_to_ptr.vmem [resolvable:$true] %s96_s19 }
  0x38   :  { %v55_v5 = vmul.f32 %v53_v3, %v53_v3  ;;  %s179_s21 = scalar_lea.vmem %s97_s19, 128  ;;  %p184_p11 = scmp.lt.s32.totalorder %s97_s19, %s97_s19 }
  0x39   :  { %v60_v6 = vmul.f32 %v54_v4, %v54_v4  ;;  %p180_p10 = scmp.ne.s32.totalorder %s97_s19, %s179_s21  ;;  %p185_p12 = scmp.lt.s32.totalorder %s179_s21, %s179_s21 }
  0x3a   :  { %v57_v7 = vsel %vm56_vm0, %v55_v5, 0.0 }
  0x3b   :  { %58 = vadd.xlane.f32.xlu0 %v57_v7  ;;  %v61_v8 = vsel %vm56_vm0, %v60_v6, 0.0  ;;  %p186_p13 = por %p185_p12, %p184_p11 }
  0x3d   :  { %p187_p0 = pnand %p186_p13, %p180_p10 }
  0x3f   :  { %62 = vadd.xlane.f32.xlu0 %v61_v8 }
  0xc8   :  { %v59_v9 = vpop.xlane.xlu0 %58 }
  0xc9   :  { %v106_v10 = vadd.f32 -1.0, %v59_v9 }
  0xcb   :  { %v67_v13 = vmax.f32 %v106_v10, 0.0 }
  0xcc   :  { %v63_v11 = vpop.xlane.xlu0 %62 }
  0xcd   :  { %v64_v12 = vsub.f32 3.0, %v63_v11 }
  0xcf   :  { %v65_v14 = vmax.f32 %v64_v12, 0.0 }
  0xd1   :  { %v68_v15 = vadd.f32 %v67_v13, %v65_v14 }
  0xd3   :  { %v77_v16 = vsel %vm76_vm1, %v68_v15, 0.0 }
  0xd4   :  { %78 = vadd.xlane.f32.xlu1 %v77_v16 }
 0x161   :  { %v79_v17 = vpop.xlane.xlu1 %78 }
 0x162   :  { %v80_v18 = vrot.slane %v79_v17, 4 }
 0x164   :  { %v81_v19 = vadd.f32 %v80_v18, %v79_v17 }
 0x166   :  { %v82_v20 = vrot.slane %v81_v19, 2 }
 0x168   :  { %v83_v21 = vadd.f32 %v82_v20, %v81_v19 }
 0x16a   :  { %v84_v22 = vrot.slane %v83_v21, 1 }
 0x16c   :  { %v85_v23 = vadd.f32 %v84_v22, %v83_v21 }
 0x16e   :  { %107 = vpush %v85_v23 }
 0x19f   :  { %s108_s20 = spop %107 }
 0x1a0   :  { %v87_v24 = vstv %s108_s20 }
 0x1a1   :  { %89 = vst [vmem:[#allocation8] sm:$0xff] %v87_v24 }
 0x1a2   :  { %190 = shalt.err (!%p187_p0)
}
 0x1a3   :  { %s191_s24 = scalar_lea.hbm %s282_s3, 128 }
 0x1a4   :  { %p192_p1 = scmp.ne.s32.totalorder %s282_s3, %s191_s24  ;;  %p195_p2 = scmp.lt.u32.totalorder %s191_s24, %s282_s3 }
 0x1a6   :  { %p197_p3 = pnand %p195_p2, %p192_p1 }
 0x1a8   :  { %200 = shalt.err (!%p197_p3)
}
 0x1a9   :  { %99 = dma.vmem_to_hbm [thread:$0]  %s97_s19, 128, %s282_s3, [#allocation4]  }
 0x1aa   :  { %205 = dma.done.wait [#allocation4], 128  }
 0x1ab   :  { %206 = vsyncadd [#allocation4], 4294967168 }
 0x1ac   :  { %103 = vsyncpa [#allocation3], 1 }
 0x1ad   :  { %104 = vsyncpa [#allocation6], 1 }
 0x1ae   :  { %105 = vsyncpa [#allocation4], 1 }

</bundles_post_ra>
